<compile_context>
chip_gen: v7x
topology: tpu7x:2x2x1
jax: 0.10.0
libtpu: 0.0.40
codegen_flags: <defaults>
</compile_context>

<pallas_src>
import jax
import jax.numpy as jnp
from jax.experimental import pallas as pl
from jax.experimental.pallas import tpu as pltpu

ALPHA_SAL = 0.7
EPS = 1e-15     # matches the (float32) torch reference; below f32 ulp except near 0/1
W0 = 1.0
W1 = 1.12


def _f32(x):
    # Static branch: only cast when the model genuinely produces a non-f32 dtype.
    return x if x.dtype == jnp.float32 else x.astype(jnp.float32)


def _h3sum(x, col_first, col_last):
    """Horizontal 3-tap box sum with zero padding at the image's left/right edge."""
    w = x.shape[-1]
    left = jnp.where(col_first, 0.0, pltpu.roll(x, 1, x.ndim - 1))       # x[:, j-1]
    right = jnp.where(col_last, 0.0, pltpu.roll(x, w - 1, x.ndim - 1))   # x[:, j+1]
    return x + left + right


def _laplacian_edges(x, h3_top, h3_bot, col_first, col_last, row_first, row_last):
    """relu(tanh(conv2d(x, 3x3 Laplacian, padding=1))) for one (TH, W) row slab.

    h3_top / h3_bot: (1, W) horizontal 3-sums of the halo rows above/below the
    slab (already zeroed at the image border), or scalar 0.0 for the
    single-tile kernel (image border on both sides).
    """
    th = x.shape[0]
    h3 = _h3sum(x, col_first, col_last)
    above = jnp.where(row_first, h3_top, pltpu.roll(h3, 1, 0))
    below = jnp.where(row_last, h3_bot, pltpu.roll(h3, th - 1, 0))
    box = above + h3 + below            # 3x3 box sum (includes center)
    conv = 9.0 * x - box                # == 8*center - sum(8 neighbors)
    return jnp.maximum(jnp.tanh(conv), 0.0)


def _partial_loss_sum(pred, gt, pred_edges, gt_edges):
    # Weighted BCE (saliency term) — raw sum; single 1/(B*H*W) happens in the wrapper.
    wbce = (-W1 * gt * jnp.log(pred + EPS)
            - W0 * (1.0 - gt) * jnp.log(1.0 - pred + EPS))
    sal_sum = jnp.sum(wbce)
    # F.binary_cross_entropy on edges; torch clamps the log terms at -100.
    ln_p = jnp.maximum(jnp.log(pred_edges), -100.0)
    ln_1mp = jnp.maximum(jnp.log(1.0 - pred_edges), -100.0)
    bce = -gt_edges * ln_p - (1.0 - gt_edges) * ln_1mp
    edge_sum = jnp.sum(bce)
    return ALPHA_SAL * sal_sum + (1.0 - ALPHA_SAL) * edge_sum


def _edge_saliency_halo_kernel(pred_ref, pred_top_ref, pred_bot_ref,
                               gt_ref, gt_top_ref, gt_bot_ref, out_ref):
    t = pl.program_id(1)
    at_top = t == 0
    at_bot = t == pl.num_programs(1) - 1

    pred = _f32(pred_ref[0])            # (TH, W)
    gt = _f32(gt_ref[0])                # (TH, W)
    th, w = pred.shape
    hb = pred_top_ref.shape[1]          # halo row-block height (static, == 8)

    # Hoisted boundary masks: one iota + compare pair per shape per grid step.
    col = jax.lax.broadcasted_iota(jnp.int32, (th, w), 1)
    col_first, col_last = col == 0, col == w - 1
    col_r = jax.lax.broadcasted_iota(jnp.int32, (1, w), 1)
    col_first_r, col_last_r = col_r == 0, col_r == w - 1
    row = jax.lax.broadcasted_iota(jnp.int32, (th, w), 0)
    row_first, row_last = row == 0, row == th - 1

    def halo_h3(ref, local_row, is_border):
        r = _f32(ref[0][local_row:local_row + 1, :])     # (1, W) halo row
        r = jnp.where(is_border, 0.0, r)                 # zero pad at image border
        return _h3sum(r, col_first_r, col_last_r)

    gt_edges = _laplacian_edges(
        gt, halo_h3(gt_top_ref, hb - 1, at_top), halo_h3(gt_bot_ref, 0, at_bot),
        col_first, col_last, row_first, row_last)
    pred_edges = _laplacian_edges(
        pred, halo_h3(pred_top_ref, hb - 1, at_top), halo_h3(pred_bot_ref, 0, at_bot),
        col_first, col_last, row_first, row_last)

    partial = _partial_loss_sum(pred, gt, pred_edges, gt_edges)
    out_ref[...] = jnp.full(out_ref.shape, partial, dtype=jnp.float32)


def _edge_saliency_single_kernel(pred_ref, gt_ref, out_ref):
    """Whole image per step: zero padding on all four sides is synthesized in-kernel."""
    pred = _f32(pred_ref[0])            # (H, W)
    gt = _f32(gt_ref[0])
    th, w = pred.shape

    col = jax.lax.broadcasted_iota(jnp.int32, (th, w), 1)
    col_first, col_last = col == 0, col == w - 1
    row = jax.lax.broadcasted_iota(jnp.int32, (th, w), 0)
    row_first, row_last = row == 0, row == th - 1

    gt_edges = _laplacian_edges(gt, 0.0, 0.0, col_first, col_last, row_first, row_last)
    pred_edges = _laplacian_edges(pred, 0.0, 0.0, col_first, col_last, row_first, row_last)

    partial = _partial_loss_sum(pred, gt, pred_edges, gt_edges)
    out_ref[...] = jnp.full(out_ref.shape, partial, dtype=jnp.float32)


def _vmem_capacity_bytes():
    try:
        cap = getattr(pltpu.get_tpu_info(), "vmem_capacity_bytes", None)
        if cap:
            return int(cap)
    except Exception:
        pass
    return 64 * 2**20           # v7x per-TC capacity — the safe lower bound


def _choose_tile_h(h, w, temp_budget):
    """Largest multiple-of-8 divisor of H whose ~14 live f32 (tile_h, W) temporaries
    fit the scoped-VMEM temporaries budget."""
    if h % 8 != 0:
        # TODO(synk): masked partial tiles for awkward H; whole-image fallback for now.
        return h
    bytes_per_row = 14 * w * 4
    max_rows = min(1024, max(8, (temp_budget // bytes_per_row) // 8 * 8))
    if h <= max_rows:
        return h
    for th in range(max_rows, 7, -8):
        if h % th == 0:
            return th
    return h


def edge_saliency_loss(y_pred, y_gt):
    """y_pred, y_gt: NCHW with C == 1 (matches the single-channel Laplacian)."""
    b, c, h, w = y_pred.shape
    assert c == 1, "EdgeSaliencyLoss Laplacian kernel expects a single channel"
    pred = y_pred.reshape(b, h, w)
    gt = y_gt.reshape(b, h, w)
    itemsize = jnp.dtype(y_pred.dtype).itemsize

    # Generation-aware VMEM budgets (v7x: 64 MiB per TC; v5e/v6e: 128 MiB).
    small_vmem = _vmem_capacity_bytes() <= 64 * 2**20
    temp_budget = (16 if small_vmem else 28) * 2**20
    vmem_limit_cap = (36 if small_vmem else 64) * 2**20

    def est_vmem(tile_h, halo):
        in_elems = tile_h * w + (2 * 8 * w if halo else 0)
        return (2 * in_elems * itemsize * 2     # double-buffered pred/gt (+halos)
                + 14 * tile_h * w * 4           # live f32 temporaries
                + 2 * 8 * 128 * 4)              # output blocks

    tile_h = _choose_tile_h(h, w, temp_budget)
    num_t = h // tile_h
    # Avoid tiny slabs (per-step pipeline + 6x DMA-setup overhead dominates): fall
    # back to one whole-image tile if it still fits the scoped-VMEM cap.
    if num_t > 1 and tile_h < 64 and est_vmem(h, False) + (2 << 20) <= vmem_limit_cap:
        tile_h, num_t = h, 1
    # Keep >= 2 parallel grid points so v7x's second TensorCore has work.
    if b * num_t < 2 and h % 16 == 0 and h >= 16:
        tile_h, num_t = h // 2, 2

    use_halo = num_t > 1
    vmem_limit = int(min(max(est_vmem(tile_h, use_halo) + (2 << 20), 16 * 2**20),
                         vmem_limit_cap))

    cost = pl.CostEstimate(
        flops=60 * b * h * w,
        transcendentals=6 * b * h * w,                       # 2x tanh + 4x log per elem
        bytes_accessed=2 * b * h * w * itemsize + b * num_t * 8 * 128 * 4,
    )
    out_shape = jax.ShapeDtypeStruct((b, num_t, 8, 128), jnp.float32)

    if use_halo:
        hb = 8
        num_hb = h // hb
        th_over_hb = tile_h // hb
        main_map = lambda bi, ti: (bi, ti, 0)
        # Row t*TILE_H - 1 lives in 8-row block t*th_over_hb - 1 (clamped; zero-masked
        # in-kernel when the slab is at the image top).  Symmetrically for the bottom.
        top_map = lambda bi, ti: (bi, jnp.maximum(ti * th_over_hb - 1, 0), 0)
        bot_map = lambda bi, ti: (bi, jnp.minimum((ti + 1) * th_over_hb, num_hb - 1), 0)
        out = pl.pallas_call(
            _edge_saliency_halo_kernel,
            out_shape=out_shape,
            grid=(b, num_t),
            in_specs=[
                pl.BlockSpec((1, tile_h, w), main_map),   # pred slab
                pl.BlockSpec((1, hb, w), top_map),        # pred halo rows above
                pl.BlockSpec((1, hb, w), bot_map),        # pred halo rows below
                pl.BlockSpec((1, tile_h, w), main_map),   # gt slab
                pl.BlockSpec((1, hb, w), top_map),        # gt halo rows above
                pl.BlockSpec((1, hb, w), bot_map),        # gt halo rows below
            ],
            out_specs=pl.BlockSpec((1, 1, 8, 128), lambda bi, ti: (bi, ti, 0, 0)),
            compiler_params=pltpu.CompilerParams(
                dimension_semantics=("parallel", "parallel"),
                vmem_limit_bytes=vmem_limit),
            cost_estimate=cost,
        )(pred, pred, pred, gt, gt, gt)
    else:
        out = pl.pallas_call(
            _edge_saliency_single_kernel,
            out_shape=out_shape,
            grid=(b,),
            in_specs=[
                pl.BlockSpec((1, h, w), lambda bi: (bi, 0, 0)),   # pred (whole image)
                pl.BlockSpec((1, h, w), lambda bi: (bi, 0, 0)),   # gt   (whole image)
            ],
            out_specs=pl.BlockSpec((1, 1, 8, 128), lambda bi: (bi, 0, 0, 0)),
            compiler_params=pltpu.CompilerParams(
                dimension_semantics=("parallel",),
                vmem_limit_bytes=vmem_limit),
            cost_estimate=cost,
        )(pred, gt)

    partials = out[:, :, 0, 0]                        # (B, num_t) per-slab partial sums
    return jnp.sum(partials) * (1.0 / (b * h * w))    # single global normalization


def _reference_jax(y_pred, y_gt):
    # pure-JAX reference (same math, lax.conv for the Laplacian) for a sanity check
    lap = jnp.array([[-1., -1., -1.], [-1., 8., -1.], [-1., -1., -1.]],
                    dtype=jnp.float32).reshape(1, 1, 3, 3)
    conv = lambda x: jax.lax.conv_general_dilated(
        x.astype(jnp.float32), lap, (1, 1), ((1, 1), (1, 1)),
        dimension_numbers=("NCHW", "OIHW", "NCHW"),
        precision=jax.lax.Precision.HIGHEST)
    gt_e = jnp.maximum(jnp.tanh(conv(y_gt)), 0.0)
    pr_e = jnp.maximum(jnp.tanh(conv(y_pred)), 0.0)
    sal = jnp.mean(-W1 * y_gt * jnp.log(y_pred + EPS)
                   - W0 * (1. - y_gt) * jnp.log(1. - y_pred + EPS))
    edge = jnp.mean(-gt_e * jnp.maximum(jnp.log(pr_e), -100.)
                    - (1. - gt_e) * jnp.maximum(jnp.log(1. - pr_e), -100.))
    return ALPHA_SAL * sal + (1. - ALPHA_SAL) * edge


if __name__ == "__main__":
    key = jax.random.PRNGKey(0)
    k1, k2, k3, k4 = jax.random.split(key, 4)

    # Case 1: B=2 — single-tile (no-halo) path, grid already has >= 2 parallel points.
    B, C, H, W = 2, 1, 16, 16
    y_pred = jax.nn.sigmoid(jax.random.normal(k1, (B, C, H, W), jnp.float32))
    y_gt = (jax.random.uniform(k2, (B, C, H, W)) > 0.5).astype(jnp.float32)
    loss = edge_saliency_loss(y_pred, y_gt)
    jax.block_until_ready(loss)
    ref = _reference_jax(y_pred, y_gt)
    assert jnp.allclose(loss, ref, rtol=1e-4, atol=1e-4), (loss, ref)

    # Case 2: B=1 — forced 2-slab split exercises the cross-tile halo path.
    B2, H2, W2 = 1, 32, 16
    y_pred2 = jax.nn.sigmoid(jax.random.normal(k3, (B2, 1, H2, W2), jnp.float32))
    y_gt2 = (jax.random.uniform(k4, (B2, 1, H2, W2)) > 0.5).astype(jnp.float32)
    loss2 = edge_saliency_loss(y_pred2, y_gt2)
    jax.block_until_ready(loss2)
    ref2 = _reference_jax(y_pred2, y_gt2)
    assert jnp.allclose(loss2, ref2, rtol=1e-4, atol=1e-4), (loss2, ref2)

    print("KERNEL_OK")
</pallas_src>

<mosaic_0001>
module attributes {stable_mosaic.version = 11 : i64} {
  func.func @_edge_saliency_single_kernel(%arg0: i32, %arg1: memref<1x16x16xf32, #tpu.memory_space<vmem>>, %arg2: memref<1x16x16xf32, #tpu.memory_space<vmem>>, %arg3: memref<1x1x8x128xf32, #tpu.memory_space<vmem>>) attributes {dimension_semantics = [#tpu.dimension_semantics<parallel>], iteration_bounds = array<i64: 2>, scalar_prefetch = 0 : i64, scratch_operands = 0 : i64, tpu.core_type = #tpu.core_type<tc>, window_params = [{transform_indices = @transform_0, window_bounds = array<i64: 1, 16, 16>}, {transform_indices = @transform_1, window_bounds = array<i64: 1, 16, 16>}, {transform_indices = @transform_2, window_bounds = array<i64: 1, 1, 8, 128>}]} {
    %c0 = arith.constant 0 : index
    %c0_0 = arith.constant 0 : index
    %c0_1 = arith.constant 0 : index
    %0 = vector.load %arg1[%c0, %c0_0, %c0_1] : memref<1x16x16xf32, #tpu.memory_space<vmem>>, vector<1x16x16xf32>
    %1 = vector.shape_cast %0 : vector<1x16x16xf32> to vector<16x16xf32>
    %c0_2 = arith.constant 0 : index
    %c0_3 = arith.constant 0 : index
    %c0_4 = arith.constant 0 : index
    %2 = vector.load %arg2[%c0_2, %c0_3, %c0_4] : memref<1x16x16xf32, #tpu.memory_space<vmem>>, vector<1x16x16xf32>
    %3 = vector.shape_cast %2 : vector<1x16x16xf32> to vector<16x16xf32>
    %4 = tpu.iota {dimensions = array<i32: 1>} : vector<16x16xi32>
    %c0_i32 = arith.constant 0 : i32
    %5 = vector.broadcast %c0_i32 : i32 to vector<16x16xi32>
    %6 = arith.cmpi eq, %4, %5 : vector<16x16xi32>
    %c15_i32 = arith.constant 15 : i32
    %7 = vector.broadcast %c15_i32 : i32 to vector<16x16xi32>
    %8 = arith.cmpi eq, %4, %7 : vector<16x16xi32>
    %9 = tpu.iota {dimensions = array<i32: 0>} : vector<16x16xi32>
    %c0_i32_5 = arith.constant 0 : i32
    %10 = vector.broadcast %c0_i32_5 : i32 to vector<16x16xi32>
    %11 = arith.cmpi eq, %9, %10 : vector<16x16xi32>
    %c15_i32_6 = arith.constant 15 : i32
    %12 = vector.broadcast %c15_i32_6 : i32 to vector<16x16xi32>
    %13 = arith.cmpi eq, %9, %12 : vector<16x16xi32>
    %c1_i32 = arith.constant 1 : i32
    %14 = tpu.dynamic_rotate %3 by %c1_i32 dim 1 : vector<16x16xf32>, i32 -> vector<16x16xf32>
    %cst = arith.constant 0.000000e+00 : f32
    %15 = vector.broadcast %cst : f32 to vector<16x16xf32>
    %16 = arith.select %6, %15, %14 : vector<16x16xi1>, vector<16x16xf32>
    %c15_i32_7 = arith.constant 15 : i32
    %17 = tpu.dynamic_rotate %3 by %c15_i32_7 dim 1 : vector<16x16xf32>, i32 -> vector<16x16xf32>
    %cst_8 = arith.constant 0.000000e+00 : f32
    %18 = vector.broadcast %cst_8 : f32 to vector<16x16xf32>
    %19 = arith.select %8, %18, %17 : vector<16x16xi1>, vector<16x16xf32>
    %20 = arith.addf %3, %16 : vector<16x16xf32>
    %21 = arith.addf %20, %19 : vector<16x16xf32>
    %c1_i32_9 = arith.constant 1 : i32
    %22 = tpu.dynamic_rotate %21 by %c1_i32_9 dim 0 : vector<16x16xf32>, i32 -> vector<16x16xf32>
    %cst_10 = arith.constant 0.000000e+00 : f32
    %23 = vector.broadcast %cst_10 : f32 to vector<16x16xf32>
    %24 = arith.select %11, %23, %22 : vector<16x16xi1>, vector<16x16xf32>
    %c15_i32_11 = arith.constant 15 : i32
    %25 = tpu.dynamic_rotate %21 by %c15_i32_11 dim 0 : vector<16x16xf32>, i32 -> vector<16x16xf32>
    %cst_12 = arith.constant 0.000000e+00 : f32
    %26 = vector.broadcast %cst_12 : f32 to vector<16x16xf32>
    %27 = arith.select %13, %26, %25 : vector<16x16xi1>, vector<16x16xf32>
    %28 = arith.addf %24, %21 : vector<16x16xf32>
    %29 = arith.addf %28, %27 : vector<16x16xf32>
    %cst_13 = arith.constant 9.000000e+00 : f32
    %30 = vector.broadcast %cst_13 : f32 to vector<16x16xf32>
    %31 = arith.mulf %30, %3 : vector<16x16xf32>
    %32 = arith.subf %31, %29 : vector<16x16xf32>
    %33 = math.tanh %32 : vector<16x16xf32>
    %cst_14 = arith.constant 0.000000e+00 : f32
    %34 = vector.broadcast %cst_14 : f32 to vector<16x16xf32>
    %35 = arith.maximumf %33, %34 : vector<16x16xf32>
    %c1_i32_15 = arith.constant 1 : i32
    %36 = tpu.dynamic_rotate %1 by %c1_i32_15 dim 1 : vector<16x16xf32>, i32 -> vector<16x16xf32>
    %cst_16 = arith.constant 0.000000e+00 : f32
    %37 = vector.broadcast %cst_16 : f32 to vector<16x16xf32>
    %38 = arith.select %6, %37, %36 : vector<16x16xi1>, vector<16x16xf32>
    %c15_i32_17 = arith.constant 15 : i32
    %39 = tpu.dynamic_rotate %1 by %c15_i32_17 dim 1 : vector<16x16xf32>, i32 -> vector<16x16xf32>
    %cst_18 = arith.constant 0.000000e+00 : f32
    %40 = vector.broadcast %cst_18 : f32 to vector<16x16xf32>
    %41 = arith.select %8, %40, %39 : vector<16x16xi1>, vector<16x16xf32>
    %42 = arith.addf %1, %38 : vector<16x16xf32>
    %43 = arith.addf %42, %41 : vector<16x16xf32>
    %c1_i32_19 = arith.constant 1 : i32
    %44 = tpu.dynamic_rotate %43 by %c1_i32_19 dim 0 : vector<16x16xf32>, i32 -> vector<16x16xf32>
    %cst_20 = arith.constant 0.000000e+00 : f32
    %45 = vector.broadcast %cst_20 : f32 to vector<16x16xf32>
    %46 = arith.select %11, %45, %44 : vector<16x16xi1>, vector<16x16xf32>
    %c15_i32_21 = arith.constant 15 : i32
    %47 = tpu.dynamic_rotate %43 by %c15_i32_21 dim 0 : vector<16x16xf32>, i32 -> vector<16x16xf32>
    %cst_22 = arith.constant 0.000000e+00 : f32
    %48 = vector.broadcast %cst_22 : f32 to vector<16x16xf32>
    %49 = arith.select %13, %48, %47 : vector<16x16xi1>, vector<16x16xf32>
    %50 = arith.addf %46, %43 : vector<16x16xf32>
    %51 = arith.addf %50, %49 : vector<16x16xf32>
    %cst_23 = arith.constant 9.000000e+00 : f32
    %52 = vector.broadcast %cst_23 : f32 to vector<16x16xf32>
    %53 = arith.mulf %52, %1 : vector<16x16xf32>
    %54 = arith.subf %53, %51 : vector<16x16xf32>
    %55 = math.tanh %54 : vector<16x16xf32>
    %cst_24 = arith.constant 0.000000e+00 : f32
    %56 = vector.broadcast %cst_24 : f32 to vector<16x16xf32>
    %57 = arith.maximumf %55, %56 : vector<16x16xf32>
    %cst_25 = arith.constant -1.120000e+00 : f32
    %58 = vector.broadcast %cst_25 : f32 to vector<16x16xf32>
    %59 = arith.mulf %58, %3 : vector<16x16xf32>
    %cst_26 = arith.constant 1.000000e-15 : f32
    %60 = vector.broadcast %cst_26 : f32 to vector<16x16xf32>
    %61 = arith.addf %1, %60 : vector<16x16xf32>
    %62 = math.log %61 : vector<16x16xf32>
    %63 = arith.mulf %59, %62 : vector<16x16xf32>
    %cst_27 = arith.constant 1.000000e+00 : f32
    %64 = vector.broadcast %cst_27 : f32 to vector<16x16xf32>
    %65 = arith.subf %64, %3 : vector<16x16xf32>
    %cst_28 = arith.constant 1.000000e+00 : f32
    %66 = vector.broadcast %cst_28 : f32 to vector<16x16xf32>
    %67 = arith.mulf %66, %65 : vector<16x16xf32>
    %cst_29 = arith.constant 1.000000e+00 : f32
    %68 = vector.broadcast %cst_29 : f32 to vector<16x16xf32>
    %69 = arith.subf %68, %1 : vector<16x16xf32>
    %cst_30 = arith.constant 1.000000e-15 : f32
    %70 = vector.broadcast %cst_30 : f32 to vector<16x16xf32>
    %71 = arith.addf %69, %70 : vector<16x16xf32>
    %72 = math.log %71 : vector<16x16xf32>
    %73 = arith.mulf %67, %72 : vector<16x16xf32>
    %74 = arith.subf %63, %73 : vector<16x16xf32>
    %75 = vector.shape_cast %74 : vector<16x16xf32> to vector<1x16x16xf32>
    %cst_31 = arith.constant dense<0.000000e+00> : vector<1xf32>
    %76 = vector.multi_reduction <add>, %75, %cst_31 [1, 2] : vector<1x16x16xf32> to vector<1xf32>
    %77 = vector.shape_cast %76 : vector<1xf32> to vector<1x1x1xf32>
    %78 = vector.extract %77[0, 0, 0] : f32 from vector<1x1x1xf32>
    %79 = math.log %57 : vector<16x16xf32>
    %cst_32 = arith.constant -1.000000e+02 : f32
    %80 = vector.broadcast %cst_32 : f32 to vector<16x16xf32>
    %81 = arith.maximumf %79, %80 : vector<16x16xf32>
    %cst_33 = arith.constant 1.000000e+00 : f32
    %82 = vector.broadcast %cst_33 : f32 to vector<16x16xf32>
    %83 = arith.subf %82, %57 : vector<16x16xf32>
    %84 = math.log %83 : vector<16x16xf32>
    %cst_34 = arith.constant -1.000000e+02 : f32
    %85 = vector.broadcast %cst_34 : f32 to vector<16x16xf32>
    %86 = arith.maximumf %84, %85 : vector<16x16xf32>
    %cst_35 = arith.constant 0.000000e+00 : f32
    %87 = vector.broadcast %cst_35 : f32 to vector<16x16xf32>
    %88 = arith.subf %87, %35 : vector<16x16xf32>
    %89 = arith.mulf %88, %81 : vector<16x16xf32>
    %cst_36 = arith.constant 1.000000e+00 : f32
    %90 = vector.broadcast %cst_36 : f32 to vector<16x16xf32>
    %91 = arith.subf %90, %35 : vector<16x16xf32>
    %92 = arith.mulf %91, %86 : vector<16x16xf32>
    %93 = arith.subf %89, %92 : vector<16x16xf32>
    %94 = vector.shape_cast %93 : vector<16x16xf32> to vector<1x16x16xf32>
    %cst_37 = arith.constant dense<0.000000e+00> : vector<1xf32>
    %95 = vector.multi_reduction <add>, %94, %cst_37 [1, 2] : vector<1x16x16xf32> to vector<1xf32>
    %96 = vector.shape_cast %95 : vector<1xf32> to vector<1x1x1xf32>
    %97 = vector.extract %96[0, 0, 0] : f32 from vector<1x1x1xf32>
    %cst_38 = arith.constant 0.699999988 : f32
    %98 = arith.mulf %cst_38, %78 : f32
    %cst_39 = arith.constant 3.000000e-01 : f32
    %99 = arith.mulf %cst_39, %97 : f32
    %100 = arith.addf %98, %99 : f32
    %101 = vector.broadcast %100 : f32 to vector<1x1x8x128xf32>
    %c0_40 = arith.constant 0 : index
    %c0_41 = arith.constant 0 : index
    %c0_42 = arith.constant 0 : index
    %c0_43 = arith.constant 0 : index
    %102 = vector.load %arg3[%c0_40, %c0_41, %c0_42, %c0_43] : memref<1x1x8x128xf32, #tpu.memory_space<vmem>>, vector<1x1x8x128xf32>
    tpu.vector_store %arg3[%c0_40, %c0_41, %c0_42, %c0_43], %101 {strides = array<i32>} : memref<1x1x8x128xf32, #tpu.memory_space<vmem>>, vector<1x1x8x128xf32>,
    return
  }
  func.func @transform_0(%arg0: i32) -> (i32, i32, i32) {
    %c0_i32 = arith.constant 0 : i32
    %c0_i32_0 = arith.constant 0 : i32
    %c0_i32_1 = arith.constant 0 : i32
    return %arg0, %c0_i32, %c0_i32_0 : i32, i32, i32
  }
  func.func @transform_1(%arg0: i32) -> (i32, i32, i32) {
    %c0_i32 = arith.constant 0 : i32
    %c0_i32_0 = arith.constant 0 : i32
    %c0_i32_1 = arith.constant 0 : i32
    return %arg0, %c0_i32, %c0_i32_0 : i32, i32, i32
  }
  func.func @transform_2(%arg0: i32) -> (i32, i32, i32, i32) {
    %c0_i32 = arith.constant 0 : i32
    %c0_i32_0 = arith.constant 0 : i32
    %c0_i32_1 = arith.constant 0 : i32
    %c0_i32_2 = arith.constant 0 : i32
    return %arg0, %c0_i32, %c0_i32_0, %c0_i32_1 : i32, i32, i32, i32
  }
}

</mosaic_0001>

<bundles_post_ra>
// kernel: tpu_custom_call.1
= control target key start
LH: loop header
LB: loop body
LE: loop exit
PB: predicated region body
PF: predicated region fallthrough
CT: control target
= control target key end

     0   :  { %7 = vsyncpa [#allocation3], 0  ;;  %s1085_s0 = inlined_call_operand.hbm [shape: f32[2,16,16], index: 0, kind: input, shape index: {}]   ;;  %s1086_s1 = inlined_call_operand.hbm [shape: f32[2,16,16], index: 1, kind: input, shape index: {}]   ;;  %s1087_s2 = inlined_call_operand.hbm [shape: f32[2,1,8,128], index: 2, kind: output, shape index: {}]  }
   0x1   :  { %9 = vsyncpa [#allocation3 + $0x1], 0 }
   0x2   :  { %10 = vsyncpa [#allocation6], 0 }
   0x3   :  { %12 = vsyncpa [#allocation6 + $0x1], 0 }
   0x4   :  { %13 = vsyncpa [#allocation4], 0 }
   0x5   :  { %15 = vsyncpa [#allocation4 + $0x1], 0  ;;  %s779_s9 = smov 0   ;;  %s781_s10 = smov 0  }
   0x6   :  { %s783_s11 = smov 0   ;;  %s785_s12 = smov 0  }
   0x7 LB: > { %s800_s13 = sadd.s32 4294967295, %s754_s12   ;;  %s521_s14 = sadd.s32 4294967294, %s754_s12   ;;  %s754_s12 = sphi %s785_s12, %s1103_s12   ;;  %s750_s11 = sphi %s783_s11, %s1102_s11   ;;  %s746_s10 = sphi %s781_s10, %s1101_s10   ;;  %s742_s9 = sphi %s779_s9, %s1100_s9  }
   0x8   : > { %s804_s15 = sadd.s32 1, %s754_s12   ;;  %s28_s16 = sadd.s32 1, %s750_s11 }
   0x9   : > { %s25_s17 = ssub.s32 %s754_s12, %s804_s15  ;;  %p35_p0 = scmp.ne.s32.totalorder %s750_s11, %s746_s10 }
   0xa   : > { %p26_p1 = scmp.eq.s32.totalorder %s25_s17, 0  ;;  %p36_p2 = scmp.eq.s32.totalorder %s754_s12, 0 }
   0xb   : > { %p41_p3 = scmp.ne.s32.totalorder %s746_s10, %s742_s9  ;;  %p42_p4 = scmp.eq.s32.totalorder %s800_s13, 0 }
   0xc   : > { %s816_s18 = scalar_select %p26_p1, %s750_s11, %s28_s16  }
   0xd   : > { %p818_p5 = por %p36_p2, %p35_p0  ;;  %p822_p6 = por %p42_p4, %p41_p3 }
   0xe   : > { %p91_p7 = scmp.eq.s32.totalorder %s800_s13, 1  ;;  %p97_p8 = scmp.eq.s32.totalorder %s521_s14, 1 }
   0xf   : > { %s1091_s20 = scalar_select %p822_p6, 1, 0 }
  0x10   : > { %p561_p10 = scmp.lt.s32.totalorder %s754_s12, 2  ;;  %p829_p11 = por %p91_p7, %p35_p0 }
  0x11   : > { %p833_p12 = por %p97_p8, %p41_p3  ;;  %s838_s23 = sand.u32 1, %s750_s11  }
  0x12   : > { %s1092_s21 = scalar_select %p829_p11, 1, 0 }
  0x13   : > { %s1093_s22 = scalar_select %p833_p12, 1, 0 }
  0x14   : > { %s538_s24 = sshll.u32 %s754_s12, 8  ;;  %s524_s25 = sshll.u32 %s838_s23, 4 }
  0x15   : > { %s847_s28 = scalar_lea.hbm %s1085_s0, %s538_s24  ;;  %s121_s29 = scalar_lea.vmem [#allocation2], %s524_s25 }
  0x16   : > { %s128_s30 = sshll.u32 %s121_s29, 4  ;;  %p853_p13 = pnand %p561_p10, %p818_p5  ;;  %s857_s30 = int_to_ptr.vmem [resolvable:$true] %s128_s30 }
  0x17   : > { %s118_s4 = scalar_lea.sflag [#allocation3], %s838_s23  ;;  %s624_s5 = scalar_lea.hbm %s847_s28, 256 }
  0x18   : > { %p625_p0 = scmp.ne.s32.totalorder %s847_s28, %s624_s5  ;;  %p626_p1 = pneg %p853_p13 }
  0x19   : > { %s629_s8 = scalar_lea.hbm %s1085_s0, 512  ;;  %p630_p4 = scmp.lt.u32.totalorder %s847_s28, %s1085_s0 }
  0x1a   : > { %p627_p2 = pnand %p626_p1, %p625_p0  ;;  %p631_p5 = scmp.lt.u32.totalorder %s629_s8, %s624_s5 }
  0x1b   : > { %p633_p8 = scmp.lt.u32.totalorder %s624_s5, %s847_s28 }
  0x1c   : > { %p628_p3 = pneg %p627_p2  ;;  %p632_p7 = por %p631_p5, %p630_p4 }
  0x1e   : > { %p634_p10 = por %p633_p8, %p632_p7 }
  0x20   : > { %p635_p9 = pnand %p634_p10, %p628_p3 }
  0x22   : > { %638 = shalt.err (!%p635_p9)
}
  0x23   : > { %s639_s17 = scalar_lea.vmem %s857_s30, 256  ;;  %s756_s19 = smov [#allocation2]  }
  0x24   : > { %p640_p0 = scmp.ne.s32.totalorder %s857_s30, %s639_s17  ;;  %s644_s26 = sshll.u32 %s756_s19, 4  ;;  %s645_s26 = int_to_ptr.vmem [resolvable:$false] %s644_s26 }
  0x25   : > { %s646_s27 = scalar_lea.vmem %s645_s26, 512  ;;  %p647_p11 = scmp.lt.s32.totalorder %s857_s30, %s645_s26 }
  0x26   : > { %p642_p2 = pnand %p640_p0, %p626_p1  ;;  %p648_p4 = scmp.lt.s32.totalorder %s646_s27, %s639_s17 }
  0x28   : > { %p643_p12 = pneg %p642_p2  ;;  %p649_p5 = por %p648_p4, %p647_p11 }
  0x2a   : > { %p650_p7 = pnand %p649_p5, %p643_p12 }
  0x2c   : > { %653 = shalt.err (!%p650_p7)
}
  0x2d   : > { %s757_s29 = smov 128   ;;  %s758_s5 = smov 8  }
  0x2e   : > { %553 = dma.hbm_to_vmem [thread:$0]  (!%p853_p13), %s847_s28, 256, %s857_s30, %s118_s4, %s757_s29, %s757_s29, %s758_s5  }
  0x2f   : > { %p530_p9 = scmp.ge.s32.totalorder %s754_s12, 1  ;;  %p157_p11 = scmp.lt.s32.totalorder %s754_s12, 3 }
  0x30   : > { %s901_s14 = scalar_lea.hbm %s1086_s1, %s538_s24  ;;  %s142_s16 = scalar_lea.vmem [#allocation5], %s524_s25 }
  0x31   : > { %p892_p12 = pnand %p530_p9, %p157_p11  ;;  %s149_s17 = sshll.u32 %s142_s16, 4  ;;  %s905_s17 = int_to_ptr.vmem [resolvable:$true] %s149_s17 }
  0x32   : > { %s139_s28 = scalar_lea.sflag [#allocation6], %s838_s23  ;;  %s654_s30 = scalar_lea.hbm %s901_s14, 256 }
  0x33   : > { %p655_p3 = scmp.ne.s32.totalorder %s901_s14, %s654_s30  ;;  %s659_s24 = scalar_lea.hbm %s1086_s1, 512 }
  0x34   : > { %p660_p0 = scmp.lt.u32.totalorder %s901_s14, %s1086_s1  ;;  %p661_p2 = scmp.lt.u32.totalorder %s659_s24, %s654_s30 }
  0x35   : > { %p657_p8 = pnand %p655_p3, %p626_p1  ;;  %p663_p5 = scmp.lt.u32.totalorder %s654_s30, %s901_s14 }
  0x36   : > { %p662_p4 = por %p661_p2, %p660_p0 }
  0x37   : > { %p658_p10 = pneg %p657_p8 }
  0x38   : > { %p664_p7 = por %p663_p5, %p662_p4 }
  0x3a   : > { %p665_p9 = pnand %p664_p7, %p658_p10 }
  0x3c   : > { %668 = shalt.err (!%p665_p9)
}
  0x3d   : > { %s669_s25 = scalar_lea.vmem %s905_s17, 256  ;;  %s759_s7 = smov [#allocation5]  }
  0x3e   : > { %p670_p11 = scmp.ne.s32.totalorder %s905_s17, %s669_s25  ;;  %s674_s8 = sshll.u32 %s759_s7, 4  ;;  %s675_s8 = int_to_ptr.vmem [resolvable:$false] %s674_s8 }
  0x3f   : > { %s676_s16 = scalar_lea.vmem %s675_s8, 512  ;;  %p677_p6 = scmp.lt.s32.totalorder %s905_s17, %s675_s8 }
  0x40   : > { %p672_p3 = pnand %p670_p11, %p626_p1  ;;  %p678_p0 = scmp.lt.s32.totalorder %s676_s16, %s669_s25 }
  0x42   : > { %p673_p8 = pneg %p672_p3  ;;  %p679_p2 = por %p678_p0, %p677_p6 }
  0x44   : > { %p680_p4 = pnand %p679_p2, %p673_p8 }
  0x46   : > { %683 = shalt.err (!%p680_p4)
}
  0x47   : > { %556 = dma.hbm_to_vmem [thread:$0]  (!%p853_p13), %s901_s14, 256, %s905_s17, %s139_s28, %s757_s29, %s757_s29, %s758_s5  }
  0x48   : > { %161 = sbr.rel (%p892_p12) target bundleno = 711 (0x2c7), region = 28  ;;  %s939_s30 = sand.u32 (!%p892_p12), 1, %s746_s10  }
  0x49   : > { %s531_s4 = sshll.u32 (!%p892_p12), %s939_s30, 4  ;;  %s164_s19 = scalar_lea.sflag (!%p892_p12), [#allocation3], %s939_s30 }
  0x4a   : > { %s167_s3 = scalar_lea.vmem (!%p892_p12), [#allocation2], %s531_s4  ;;  %p1096_p6 = scmp.ne.s32.totalorder (!%p892_p12), %s1091_s20, 0 }
  0x4f   : > { %729 = dma.done.wait (%p1096_p6), %s164_s19, 256  }
  0x50   : > { %731 = vsyncadd (%p1096_p6), %s164_s19, 4294967040  ;;  %s173_s23 = scalar_lea.sflag [#allocation6], %s939_s30  ;;  %s176_s29 = scalar_lea.vmem [#allocation5], %s531_s4 }
  0x51   : > { %733 = dma.done.wait (%p1096_p6), %s173_s23, 256  }
  0x52   : > { %735 = vsyncadd (%p1096_p6), %s173_s23, 4294967040  ;;  %v952_v0 = vld [vmem:[%s167_s3] sm:$0xff]  ;;  %s760_s5 = smov 16   ;;  %v958_v2 = vld [vmem:[%s167_s3 + $0x8] sm:$0xff]  ;;  %vm217_vm0 = vcmask 1047680   ;;  %s761_s20 = smov 113   ;;  %v206_v47 = vlaneseq }
  0x53   : > { %v954_v1 = vld [vmem:[%s176_s29] sm:$0xff]  ;;  %278 = vrot.lane.b32.xlu0 %v952_v0, %s760_s5  ;;  %v960_v3 = vld [vmem:[%s176_s29 + $0x8] sm:$0xff]  ;;  %s762_s6 = smov 127   ;;  %v348_v20 = vsub.f32 1.0, %v952_v0  ;;  %v349_v21 = vsub.f32 1.0, %v958_v2  ;;  %vm360_vm1 = vcmask 130048  }
  0x54   : > { %218 = vrot.lane.b32.xlu1 %v954_v1, %s760_s5  ;;  %v338_v22 = vadd.f32 1e-15, %v952_v0  ;;  %v339_v23 = vadd.f32 1e-15, %v958_v2  ;;  %v336_v26 = vmul.f32 -1.12, %v954_v1 }
  0x55   : > { %v350_v24 = vadd.f32 1e-15, %v348_v20  ;;  %v351_v25 = vadd.f32 1e-15, %v349_v21  ;;  %v337_v28 = vmul.f32 -1.12, %v960_v3 }
  0x56   : > { %600 = vlog2.f32 %v338_v22  ;;  %v346_v31 = vsub.f32 1.0, %v954_v1  ;;  %v347_v34 = vsub.f32 1.0, %v960_v3  ;;  %v207_v48 = vand.u32 127, %v206_v47  ;;  %s533_s14 = sshll.u32 %s939_s30, 3  ;;  %s535_s26 = sshll.u32 %s800_s13, 7 }
  0x57   : > { %281 = vrot.lane.b32.xlu0 %v958_v2, %s760_s5  ;;  %602 = vlog2.f32 %v339_v23  ;;  %v991_v51 = vshrl.u32 %v206_v47, 7  ;;  %s201_s25 = scalar_lea.vmem [#allocation7], %s533_s14  ;;  %s1041_s19 = scalar_lea.hbm %s1087_s2, %s535_s26 }
  0x58   : > { %221 = vrot.lane.b32.xlu1 %v960_v3, %s760_s5  ;;  %604 = vlog2.f32 %v350_v24  ;;  %vm208_vm2 = vcmp.eq.s32.totalorder %v207_v48, 0  ;;  %vm209_vm3 = vcmp.eq.s32.totalorder %v207_v48, 15  ;;  %s428_s7 = sshll.u32 %s201_s25, 4  ;;  %s415_s3 = scalar_lea.sflag [#allocation4], %s939_s30  ;;  %s1043_s7 = int_to_ptr.vmem [resolvable:$true] %s428_s7 }
  0x59   : > { %606 = vlog2.f32 %v351_v25  ;;  %v212_v58 = vadd.s32 8, %v991_v51  ;;  %vm213_vm4 = vcmp.eq.s32.totalorder %v991_v51, 0  ;;  %vm254_vm6 = vcmp.lt.s32.totalorder %v991_v51, 1  ;;  %s684_s23 = scalar_lea.vmem %s1043_s7, 128  ;;  %p1097_p1 = scmp.ne.s32.totalorder %s1092_s21, 0 }
  0x5a   : > { %vm261_vm7 = vcmp.lt.s32.totalorder %v991_v51, 7  ;;  %p685_p13 = scmp.ne.s32.totalorder %s1043_s7, %s684_s23  ;;  %s763_s13 = smov [#allocation7]  }
  0x5b   : > { %vm216_vm5 = vcmp.eq.s32.totalorder %v212_v58, 15  ;;  %s688_s29 = sshll.u32 %s763_s13, 4  ;;  %s689_s29 = int_to_ptr.vmem [resolvable:$false] %s688_s29 }
  0x5c   : > { %p686_p12 = pnand %p685_p13, %p1097_p1  ;;  %p691_p5 = scmp.lt.s32.totalorder %s1043_s7, %s689_s29 }
  0x5e   : > { %p687_p10 = pneg %p686_p12 }
  0x60   : > { %v601_v27 = vpop.eup %600 }
  0x61   : > { %v603_v29 = vpop.eup %602  ;;  %v341_v30 = vmul.f32 0.6931472, %v601_v27 }
  0x62   : > { %v605_v32 = vpop.eup %604  ;;  %v343_v33 = vmul.f32 0.6931472, %v603_v29 }
  0x63   : > { %v607_v35 = vpop.eup %606  ;;  %v344_v36 = vmul.f32 %v341_v30, %v336_v26  ;;  %v353_v37 = vmul.f32 0.6931472, %v605_v32 }
  0x64   : > { %v345_v38 = vmul.f32 %v343_v33, %v337_v28  ;;  %v355_v39 = vmul.f32 0.6931472, %v607_v35 }
  0x65   : > { %v356_v40 = vmul.f32 %v353_v37, %v346_v31 }
  0x66   : > { %v357_v41 = vmul.f32 %v355_v39, %v347_v34 }
  0x67   : > { %v358_v42 = vsub.f32 %v344_v36, %v356_v40  ;;  %v271_v40 = vmul.f32 9.0, %v960_v3 }
  0x68   : > { %v359_v43 = vsub.f32 %v345_v38, %v357_v41 }
  0x69   : > { %v361_v44 = vsel %vm360_vm1, %v358_v42, 0.0 }
  0x6a   : > { %v362_v45 = vsel %vm360_vm1, %v359_v43, 0.0  ;;  %v270_v43 = vmul.f32 9.0, %v954_v1 }
  0x6b   : > { %v363_v46 = vadd.f32 %v362_v45, %v361_v44 }
  0xc5   : > { %v279_v4 = vpop.permute.xlu0 %278 }
  0xc6   : > { %v219_v5 = vpop.permute.xlu1 %218  ;;  %v280_v6 = vsel %vm217_vm0, %v279_v4, %v952_v0 }
  0xc7   : > { %284 = vrot.lane.b32.xlu0 %v280_v6, %s760_s5  ;;  %v220_v7 = vsel %vm217_vm0, %v219_v5, %v954_v1 }
  0xc9   : > { %v282_v8 = vpop.permute.xlu0 %281 }
  0xca   : > { %v222_v9 = vpop.permute.xlu1 %221  ;;  %v283_v10 = vsel %vm217_vm0, %v282_v8, %v958_v2 }
  0xcb   : > { %286 = vrot.lane.b32.xlu1 %v283_v10, %s760_s5  ;;  %224 = vrot.lane.b32.xlu0 %v220_v7, %s760_s5  ;;  %v223_v11 = vsel %vm217_vm0, %v222_v9, %v960_v3 }
  0xcf   : > { %226 = vrot.lane.b32.xlu1 %v223_v11, %s760_s5  ;;  %s690_s5 = scalar_lea.vmem %s689_s29, 256 }
  0xd0   : > { %p692_p7 = scmp.lt.s32.totalorder %s690_s5, %s684_s23 }
  0xd2   : > { %p693_p9 = por %p692_p7, %p691_p5 }
  0xd4   : > { %p694_p11 = pnand %p693_p9, %p687_p10 }
 0x139   : > { %v285_v12 = vpop.permute.xlu0 %284 }
 0x13a   : > { %v288_v13 = vsel %vm217_vm0, %v285_v12, %v952_v0 }
 0x13b   : > { %292 = vrot.lane.b32.xlu0 %v288_v13, %s761_s20 }
 0x13d   : > { %v287_v14 = vpop.permute.xlu1 %286  ;;  %v225_v15 = vpop.permute.xlu0 %224 }
 0x13e   : > { %v289_v16 = vsel %vm217_vm0, %v287_v14, %v958_v2  ;;  %v228_v17 = vsel %vm217_vm0, %v225_v15, %v954_v1  ;;  %v329_v14 = vmul.f32 9.0, %v958_v2 }
 0x13f   : > { %294 = vrot.lane.b32.xlu1 %v289_v16, %s761_s20  ;;  %300 = vrot.lane.b32.xlu0 %v288_v13, %s762_s6 }
 0x141   : > { %v227_v18 = vpop.permute.xlu1 %226 }
 0x142   : > { %v229_v19 = vsel %vm217_vm0, %v227_v18, %v960_v3 }
 0x143   : > { %302 = vrot.lane.b32.xlu1 %v289_v16, %s762_s6  ;;  %232 = vrot.lane.b32.xlu0 %v228_v17, %s761_s20 }
 0x147   : > { %234 = vrot.lane.b32.xlu1 %v229_v19, %s761_s20  ;;  %240 = vrot.lane.b32.xlu0 %v228_v17, %s762_s6 }
 0x14b   : > { %242 = vrot.lane.b32.xlu1 %v229_v19, %s762_s6 }
 0x166   : > { %364 = vadd.xlane.f32.xlu0 %v363_v46 }
 0x1ad   : > { %v293_v49 = vpop.permute.xlu0 %292 }
 0x1ae   : > { %v298_v50 = vsel %vm208_vm2, 0.0, %v293_v49 }
 0x1af   : > { %v308_v54 = vadd.f32 %v298_v50, %v952_v0 }
 0x1b1   : > { %v295_v52 = vpop.permute.xlu1 %294  ;;  %v301_v53 = vpop.permute.xlu0 %300 }
 0x1b2   : > { %v299_v55 = vsel %vm208_vm2, 0.0, %v295_v52  ;;  %v306_v56 = vsel %vm209_vm3, 0.0, %v301_v53 }
 0x1b3   : > { %v310_v57 = vadd.f32 %v308_v54, %v306_v56  ;;  %v309_v59 = vadd.f32 %v299_v55, %v958_v2  ;;  %v328_v2 = vmul.f32 9.0, %v952_v0 }
 0x1b5   : > { %v303_v60 = vpop.permute.xlu1 %302  ;;  %v233_v61 = vpop.permute.xlu0 %232  ;;  %v312_v5 = vrot.slane %v310_v57, 7  ;;  %v318_v6 = vrot.slane %v310_v57, 1 }
 0x1b6   : > { %v307_v62 = vsel %vm209_vm3, 0.0, %v303_v60  ;;  %v238_v63 = vsel %vm208_vm2, 0.0, %v233_v61 }
 0x1b7   : > { %v311_v4 = vadd.f32 %v309_v59, %v307_v62  ;;  %v248_v9 = vadd.f32 %v238_v63, %v954_v1 }
 0x1b9   : > { %v313_v7 = vrot.slane %v311_v4, 7  ;;  %v319_v8 = vrot.slane %v311_v4, 1  ;;  %v235_v10 = vpop.permute.xlu1 %234  ;;  %v241_v11 = vpop.permute.xlu0 %240 }
 0x1ba   : > { %v239_v12 = vsel %vm208_vm2, 0.0, %v235_v10  ;;  %v246_v13 = vsel %vm209_vm3, 0.0, %v241_v11 }
 0x1bb   : > { %v314_v15 = vsel %vm254_vm6, %v312_v5, %v313_v7  ;;  %v315_v16 = vsel %vm254_vm6, %v313_v7, %v312_v5  ;;  %v321_v17 = vsel %vm261_vm7, %v319_v8, %v318_v6  ;;  %v249_v21 = vadd.f32 %v239_v12, %v960_v3 }
 0x1bc   : > { %v316_v18 = vsel %vm213_vm4, 0.0, %v315_v16  ;;  %v323_v19 = vsel %vm216_vm5, 0.0, %v321_v17  ;;  %v325_v20 = vadd.f32 %v314_v15, %v311_v4  ;;  %v250_v23 = vadd.f32 %v248_v9, %v246_v13 }
 0x1bd   : > { %v324_v22 = vadd.f32 %v316_v18, %v310_v57  ;;  %v243_v24 = vpop.permute.xlu1 %242  ;;  %v320_v25 = vsel %vm261_vm7, %v318_v6, %v319_v8 }
 0x1be   : > { %v327_v26 = vadd.f32 %v325_v20, %v323_v19  ;;  %v247_v27 = vsel %vm209_vm3, 0.0, %v243_v24  ;;  %v252_v29 = vrot.slane %v250_v23, 7  ;;  %v259_v32 = vrot.slane %v250_v23, 1 }
 0x1bf   : > { %v326_v28 = vadd.f32 %v324_v22, %v320_v25  ;;  %v251_v30 = vadd.f32 %v249_v21, %v247_v27 }
 0x1c0   : > { %v331_v31 = vsub.f32 %v329_v14, %v327_v26 }
 0x1c1   : > { %v330_v33 = vsub.f32 %v328_v2, %v326_v28  ;;  %v253_v34 = vrot.slane %v251_v30, 7  ;;  %v260_v35 = vrot.slane %v251_v30, 1 }
 0x1c2   : > { %608 = vtanh.f32 %v331_v31 }
 0x1c3   : > { %610 = vtanh.f32 %v330_v33  ;;  %v255_v0 = vsel %vm254_vm6, %v252_v29, %v253_v34  ;;  %v256_v36 = vsel %vm254_vm6, %v253_v34, %v252_v29  ;;  %v263_v38 = vsel %vm261_vm7, %v260_v35, %v259_v32 }
 0x1c4   : > { %v257_v37 = vsel %vm213_vm4, 0.0, %v256_v36  ;;  %v267_v39 = vadd.f32 %v255_v0, %v251_v30  ;;  %v265_v41 = vsel %vm216_vm5, 0.0, %v263_v38  ;;  %v262_v44 = vsel %vm261_vm7, %v259_v32, %v260_v35 }
 0x1c5   : > { %v266_v42 = vadd.f32 %v257_v37, %v250_v23 }
 0x1c6   : > { %v269_v45 = vadd.f32 %v267_v39, %v265_v41 }
 0x1c7   : > { %v268_v46 = vadd.f32 %v266_v42, %v262_v44 }
 0x1c8   : > { %v273_v47 = vsub.f32 %v271_v40, %v269_v45 }
 0x1c9   : > { %v272_v48 = vsub.f32 %v270_v43, %v268_v46 }
 0x1ca   : > { %612 = vtanh.f32 %v273_v47 }
 0x1cb   : > { %614 = vtanh.f32 %v272_v48 }
 0x1cc   : > { %v609_v49 = vpop.eup %608 }
 0x1cd   : > { %v611_v50 = vpop.eup %610  ;;  %v335_v52 = vmax.f32 %v609_v49, 0.0 }
 0x1ce   : > { %v334_v53 = vmax.f32 %v611_v50, 0.0 }
 0x1cf   : > { %616 = vlog2.f32 %v335_v52  ;;  %v380_v3 = vsub.f32 1.0, %v335_v52 }
 0x1d0   : > { %618 = vlog2.f32 %v334_v53  ;;  %v379_v54 = vsub.f32 1.0, %v334_v53 }
 0x1d1   : > { %620 = vlog2.f32 %v380_v3 }
 0x1d2   : > { %622 = vlog2.f32 %v379_v54 }
 0x1d4   : > { %v613_v1 = vpop.eup %612 }
 0x1d5   : > { %v615_v55 = vpop.eup %614  ;;  %v277_v57 = vmax.f32 %v613_v1, 0.0 }
 0x1d6   : > { %v276_v60 = vmax.f32 %v615_v55, 0.0 }
 0x1d7   : > { %v388_v8 = vsub.f32 0.0, %v277_v57  ;;  %v392_v9 = vsub.f32 1.0, %v277_v57 }
 0x1d8   : > { %v387_v11 = vsub.f32 0.0, %v276_v60  ;;  %v391_v12 = vsub.f32 1.0, %v276_v60 }
 0x1d9   : > { %v617_v51 = vpop.eup %616 }
 0x1da   : > { %v619_v56 = vpop.eup %618  ;;  %v376_v58 = vmul.f32 0.6931472, %v617_v51 }
 0x1db   : > { %v621_v59 = vpop.eup %620  ;;  %v374_v61 = vmul.f32 0.6931472, %v619_v56 }
 0x1dc   : > { %v623_v62 = vpop.eup %622  ;;  %v378_v63 = vmax.f32 %v376_v58, -100.0  ;;  %v384_v4 = vmul.f32 0.6931472, %v621_v59 }
 0x1dd   : > { %v377_v5 = vmax.f32 %v374_v61, -100.0  ;;  %v382_v6 = vmul.f32 0.6931472, %v623_v62 }
 0x1de   : > { %v386_v7 = vmax.f32 %v384_v4, -100.0  ;;  %v390_v13 = vmul.f32 %v388_v8, %v378_v63 }
 0x1df   : > { %v385_v10 = vmax.f32 %v382_v6, -100.0  ;;  %v389_v15 = vmul.f32 %v387_v11, %v377_v5 }
 0x1e0   : > { %v394_v14 = vmul.f32 %v392_v9, %v386_v7 }
 0x1e1   : > { %v393_v16 = vmul.f32 %v391_v12, %v385_v10 }
 0x1e2   : > { %v396_v17 = vsub.f32 %v390_v13, %v394_v14 }
 0x1e3   : > { %v395_v18 = vsub.f32 %v389_v15, %v393_v16 }
 0x1e4   : > { %v398_v19 = vsel %vm360_vm1, %v396_v17, 0.0 }
 0x1e5   : > { %v397_v20 = vsel %vm360_vm1, %v395_v18, 0.0 }
 0x1e6   : > { %v399_v21 = vadd.f32 %v398_v19, %v397_v20 }
 0x1e8   : > { %400 = vadd.xlane.f32.xlu1 %v399_v21 }
 0x1f3   : > { %v365_v22 = vpop.xlane.xlu0 %364 }
 0x1f4   : > { %v366_v2 = vrot.slane %v365_v22, 4 }
 0x1f6   : > { %v367_v23 = vadd.f32 %v366_v2, %v365_v22 }
 0x1f8   : > { %v368_v24 = vrot.slane %v367_v23, 2 }
 0x1fa   : > { %v369_v25 = vadd.f32 %v368_v24, %v367_v23 }
 0x1fc   : > { %v370_v26 = vrot.slane %v369_v25, 1 }
 0x1fe   : > { %v371_v27 = vadd.f32 %v370_v26, %v369_v25 }
 0x200   : > { %540 = vpush %v371_v27 }
 0x231   : > { %s541_s17 = spop %540 }
 0x232   : > { %s409_s28 = smul.f32 0.7, %s541_s17 }
 0x275   : > { %v401_v28 = vpop.xlane.xlu1 %400 }
 0x276   : > { %v402_v29 = vrot.slane %v401_v28, 4 }
 0x278   : > { %v403_v30 = vadd.f32 %v402_v29, %v401_v28 }
 0x27a   : > { %v404_v31 = vrot.slane %v403_v30, 2 }
 0x27c   : > { %v405_v32 = vadd.f32 %v404_v31, %v403_v30 }
 0x27e   : > { %v406_v33 = vrot.slane %v405_v32, 1 }
 0x280   : > { %v407_v34 = vadd.f32 %v406_v33, %v405_v32 }
 0x282   : > { %542 = vpush %v407_v34 }
 0x2b3   : > { %s543_s24 = spop %542 }
 0x2b4   : > { %s410_s27 = smul.f32 0.3, %s543_s24 }
 0x2b6   : > { %s411_s8 = sadd.f32 %s410_s27, %s409_s28 }
 0x2b8   : > { %v412_v35 = vstv %s411_s8 }
 0x2b9   : > { %413 = vst [vmem:[%s201_s25] sm:$0xff] %v412_v35 }
 0x2ba   : > { %697 = shalt.err (!%p694_p11)
}
 0x2bb   : > { %s698_s30 = scalar_lea.hbm %s1041_s19, 128  ;;  %s702_s14 = scalar_lea.hbm %s1087_s2, 256 }
 0x2bc   : > { %p699_p3 = scmp.ne.s32.totalorder %s1041_s19, %s698_s30  ;;  %p703_p2 = scmp.lt.u32.totalorder %s1041_s19, %s1087_s2 }
 0x2bd   : > { %p704_p4 = scmp.lt.u32.totalorder %s702_s14, %s698_s30  ;;  %p706_p13 = scmp.lt.u32.totalorder %s698_s30, %s1041_s19 }
 0x2be   : > { %p700_p8 = pnand %p699_p3, %p1097_p1 }
 0x2bf   : > { %p705_p6 = por %p704_p4, %p703_p2 }
 0x2c0   : > { %p701_p0 = pneg %p700_p8 }
 0x2c1   : > { %p707_p12 = por %p706_p13, %p705_p6 }
 0x2c3   : > { %p708_p10 = pnand %p707_p12, %p701_p0 }
 0x2c5   : > { %711 = shalt.err (!%p708_p10)
}
 0x2c6   : > { %548 = dma.vmem_to_hbm [thread:$0]  (%p1097_p1), %s1043_s7, 128, %s1041_s19, %s415_s3  }
 0x2c7 PF: > { %s440_s24 = sand.u32 1, %s742_s9   ;;  %p1098_p5 = scmp.ne.s32.totalorder %s1093_s22, 0 }
 0x2c8   : > { %p1099_p7 = scmp.ge.s32.totalorder %s754_s12, 2  ;;  %s441_s26 = scalar_lea.sflag [#allocation4], %s440_s24 }
 0x2ca   : > { %p558_p9 = pnand %p1099_p7, %p1098_p5 }
 0x2cc   : > { %737 = dma.done.wait (!%p558_p9), %s441_s26, 128  }
 0x2cd   : > { %739 = vsyncadd (!%p558_p9), %s441_s26, 4294967168  ;;  %p18_p11 = scmp.ge.s32.totalorder %s804_s15, 4   ;;  %s1100_s9 = smov %s746_s10 }
 0x2ce   : > { %s1101_s10 = smov %s750_s11  ;;  %s1102_s11 = smov %s816_s18 }
 0x2cf   : > { %s1103_s12 = smov %s804_s15  ;;  %20 = sbr.rel (!%p18_p11) target bundleno = 7 (0x7), region = 86 }
 0x2d6   :  { %446 = vsyncpa [#allocation3], 1 }
 0x2d7   :  { %448 = vsyncpa [#allocation3 + $0x1], 1 }
 0x2d8   :  { %449 = vsyncpa [#allocation6], 1 }
 0x2d9   :  { %451 = vsyncpa [#allocation6 + $0x1], 1 }
 0x2da   :  { %452 = vsyncpa [#allocation4], 1 }
 0x2db   :  { %454 = vsyncpa [#allocation4 + $0x1], 1 }

</bundles_post_ra>
